<compile_context>
chip_gen: v7x
topology: tpu7x:2x2x1
jax: 0.10.0
libtpu: 0.0.40
codegen_flags: <defaults>
</compile_context>

<pallas_src>
import functools

import jax
import jax.numpy as jnp
import numpy as np
from jax.experimental import pallas as pl
from jax.experimental.pallas import tpu as pltpu


def _drop_path_kernel(scale_ref, x_ref, o_ref):
    # scale_ref: (tile_n, 1) f32 per-sample scale; x_ref/o_ref: (tile_n, tile_d).
    o_ref[...] = x_ref[...] * scale_ref[...].astype(x_ref.dtype)


def _round_up(a, b):
    return (a + b - 1) // b * b


# Below this many bytes, skip the grid (per-step overhead dominates tiny inputs).
_SMALL_INPUT_BYTES = 256 * 1024


def drop_path_pallas(x, *, drop_prob=0.0, training=False, seed=0,
                     _force_grid=False):
    """Pallas DropPath. x may be any rank >= 1; mask is per sample (axis 0)."""
    if drop_prob == 0.0 or not training:
        return x
    keep_prob = 1.0 - drop_prob
    n = x.shape[0]
    d = int(np.prod(x.shape[1:]))
    x2 = x.reshape(n, d)

    # Per-sample uniform -> keep mask -> scale, computed once outside the
    # bandwidth-bound loop (XLA-side; negligible cost).
    u = jax.random.uniform(jax.random.PRNGKey(seed), (n, 1), dtype=jnp.float32)
    scale = (u >= jnp.float32(drop_prob)).astype(jnp.float32) * jnp.float32(
        1.0 / keep_prob
    )  # (N, 1) float32: 0 for dropped samples, 1/keep_prob for kept ones.

    nbytes = n * d * x.dtype.itemsize

    if nbytes <= _SMALL_INPUT_BYTES and not _force_grid:
        # Small fast path: one whole-array VMEM block, no grid.
        out2 = pl.pallas_call(
            _drop_path_kernel,
            out_shape=jax.ShapeDtypeStruct((n, d), x.dtype),
            in_specs=[
                pl.BlockSpec(memory_space=pltpu.MemorySpace.VMEM),  # scale
                pl.BlockSpec(memory_space=pltpu.MemorySpace.VMEM),  # x
            ],
            out_specs=pl.BlockSpec(memory_space=pltpu.MemorySpace.VMEM),
        )(scale, x2)
        return out2.reshape(x.shape)

    # Gridded, pipelined path for real activation sizes.
    d_pad = _round_up(d, 128)           # lane-aligned
    tile_d = min(d_pad, 2048)           # multiple of 128, <= 2048 lanes
    d_full = _round_up(d_pad, tile_d)   # grid divides evenly

    n_pad = _round_up(n, 8)             # sublane-aligned
    tile_n = min(n_pad, 256)            # multiple of 8
    n_full = _round_up(n_pad, tile_n)

    x_padded = x2
    if (n_full, d_full) != (n, d):
        x_padded = jnp.pad(x2, ((0, n_full - n), (0, d_full - d)))
    scale_padded = scale
    if n_full != n:
        scale_padded = jnp.pad(scale, ((0, n_full - n), (0, 0)))

    grid = (n_full // tile_n, d_full // tile_d)
    out_padded = pl.pallas_call(
        _drop_path_kernel,
        out_shape=jax.ShapeDtypeStruct((n_full, d_full), x.dtype),
        grid=grid,
        in_specs=[
            pl.BlockSpec((tile_n, 1), lambda i, j: (i, 0)),       # scale
            pl.BlockSpec((tile_n, tile_d), lambda i, j: (i, j)),  # x
        ],
        out_specs=pl.BlockSpec((tile_n, tile_d), lambda i, j: (i, j)),
        compiler_params=pltpu.CompilerParams(
            dimension_semantics=("parallel", "parallel")
        ),
    )(scale_padded, x_padded)
    return out_padded[:n, :d].reshape(x.shape)


class DropPath:
    """Mirror of the torch nn.Module (no parameters)."""

    def __init__(self, drop_prob=None):
        self.drop_prob = 0.0 if drop_prob is None else float(drop_prob)
        self.training = True

    def __call__(self, x, seed=0):
        return drop_path_pallas(
            x, drop_prob=self.drop_prob, training=self.training, seed=seed
        )


if __name__ == "__main__":
    key = jax.random.PRNGKey(0)
    keep_check = functools.partial(np.allclose, rtol=1e-6, atol=1e-6)

    # NCHW, small shapes: batch=2, channels=4, spatial=16 (small fast path).
    x = jax.random.normal(key, (2, 4, 16, 16), dtype=jnp.float32)
    mod = DropPath(drop_prob=0.3)
    keep_prob = 1.0 - mod.drop_prob

    y_train = jax.block_until_ready(mod(x, seed=123))
    for b in range(x.shape[0]):
        yb = np.asarray(y_train[b])
        xb = np.asarray(x[b])
        is_dropped = np.allclose(yb, 0.0)
        is_kept = keep_check(yb, xb / keep_prob)
        assert is_dropped or is_kept, "sample is neither dropped nor scaled-kept"

    # Eval path: identity.
    mod.training = False
    y_eval = jax.block_until_ready(mod(x, seed=123))
    assert np.allclose(np.asarray(y_eval), np.asarray(x))

    # Exercise the gridded/pipelined path too (non-128-aligned feature dim,
    # batch > 8), forced through the grid regardless of the size threshold.
    key2 = jax.random.PRNGKey(1)
    x_big = jax.random.normal(key2, (16, 3, 40, 40), dtype=jnp.float32)
    y_big = jax.block_until_ready(
        drop_path_pallas(x_big, drop_prob=0.3, training=True, seed=7,
                         _force_grid=True)
    )
    for b in range(x_big.shape[0]):
        yb = np.asarray(y_big[b])
        xb = np.asarray(x_big[b])
        is_dropped = np.allclose(yb, 0.0)
        is_kept = keep_check(yb, xb / keep_prob)
        assert is_dropped or is_kept, "grid path: sample neither dropped nor kept"

    print("KERNEL_OK")
</pallas_src>

<mosaic_0001>
module attributes {stable_mosaic.version = 11 : i64} {
  func.func @_drop_path_kernel(%arg0: memref<2x1xf32, #tpu.memory_space<vmem>>, %arg1: memref<2x1024xf32, #tpu.memory_space<vmem>>, %arg2: memref<2x1024xf32, #tpu.memory_space<vmem>>) attributes {dimension_semantics = [], scalar_prefetch = 0 : i64, scratch_operands = 0 : i64, tpu.core_type = #tpu.core_type<tc>} {
    %c0 = arith.constant 0 : index
    %c0_0 = arith.constant 0 : index
    %0 = vector.load %arg1[%c0, %c0_0] : memref<2x1024xf32, #tpu.memory_space<vmem>>, vector<2x1024xf32>
    %c0_1 = arith.constant 0 : index
    %c0_2 = arith.constant 0 : index
    %1 = vector.load %arg0[%c0_1, %c0_2] : memref<2x1xf32, #tpu.memory_space<vmem>>, vector<2x1xf32>
    %2 = vector.broadcast %1 : vector<2x1xf32> to vector<2x1024xf32>
    %3 = arith.mulf %0, %2 : vector<2x1024xf32>
    %c0_3 = arith.constant 0 : index
    %c0_4 = arith.constant 0 : index
    %4 = vector.load %arg2[%c0_3, %c0_4] : memref<2x1024xf32, #tpu.memory_space<vmem>>, vector<2x1024xf32>
    tpu.vector_store %arg2[%c0_3, %c0_4], %3 {strides = array<i32>} : memref<2x1024xf32, #tpu.memory_space<vmem>>, vector<2x1024xf32>,
    return
  }
}

</mosaic_0001>

<bundles_post_ra>
// kernel: tpu_custom_call.1
= control target key start
LH: loop header
LB: loop body
LE: loop exit
PB: predicated region body
PF: predicated region fallthrough
CT: control target
= control target key end

     0   :  { %7 = vsyncpa [#allocation3], 0  ;;  %s157_s0 = inlined_call_operand.vmem [shape: f32[2,1], index: 0, kind: input, shape index: {}]   ;;  %s158_s1 = inlined_call_operand.hbm [shape: f32[2,1024], index: 1, kind: input, shape index: {}]   ;;  %s159_s2 = inlined_call_operand.hbm [shape: f32[2,1024], index: 2, kind: output, shape index: {}]  }
   0x1   :  { %8 = vsyncpa [#allocation4], 0  ;;  %s111_s9 = smov [#allocation2]   ;;  %s63_s13 = scalar_lea.hbm %s158_s1, 256 }
   0x2   :  { %s17_s10 = sshll.u32 %s111_s9, 4  ;;  %p64_p0 = scmp.ne.s32.totalorder %s158_s1, %s63_s13  ;;  %s18_s10 = int_to_ptr.vmem [resolvable:$true] %s17_s10 }
   0x3   :  { %p67_p1 = scmp.lt.u32.totalorder %s63_s13, %s158_s1 }
   0x5   :  { %p69_p2 = pnand %p67_p1, %p64_p0 }
   0x7   :  { %72 = shalt.err (!%p69_p2)
}
   0x8   :  { %s73_s18 = scalar_lea.vmem %s18_s10, 256  ;;  %p78_p4 = scmp.lt.s32.totalorder %s18_s10, %s18_s10 }
   0x9   :  { %p74_p3 = scmp.ne.s32.totalorder %s18_s10, %s73_s18  ;;  %p79_p5 = scmp.lt.s32.totalorder %s73_s18, %s73_s18 }
   0xb   :  { %p80_p6 = por %p79_p5, %p78_p4 }
   0xd   :  { %p81_p7 = pnand %p80_p6, %p74_p3 }
   0xf   :  { %84 = shalt.err (!%p81_p7)
}
  0x10   :  { %20 = dma.hbm_to_vmem [thread:$0]  %s158_s1, 256, %s18_s10, [#allocation3]  }
  0x11   :  { %107 = dma.done.wait [#allocation3], 256  }
  0x12   :  { %108 = vsyncadd [#allocation3], 4294967040  ;;  %v112_v0 = vmov 0   ;;  %v26_v1 = vld [vmem:[%s157_s0] sm:$0x3]  ;;  %v34_v4 = vlaneseq  ;;  %v25_v10 = vld [vmem:[#allocation2 + $0x8] sm:$0xff] }
  0x13   :  { %62 = vset.pattern.permute.xlu0 %v112_v0  ;;  %v113_v2 = vmov 269488144   ;;  %v24_v9 = vld [vmem:[#allocation2] sm:$0xff]  ;;  %s114_s23 = smov [#allocation5]  }
  0x14   :  { %29 = vperm.xlu0 %62, %v26_v1   ;;  %v32_v3 = vunpack.c.l.s4 %v113_v2  ;;  %v35_v6 = vshrl.u32 %v34_v4, 7  ;;  %s49_s1 = sshll.u32 %s114_s23, 4  ;;  %s50_s1 = int_to_ptr.vmem [resolvable:$true] %s49_s1 }
  0x15   :  { %s85_s24 = scalar_lea.vmem %s50_s1, 256  ;;  %p90_p9 = scmp.lt.s32.totalorder %s50_s1, %s50_s1 }
  0x16   :  { %v33_v5 = vunpack.c.0.s8 %v32_v3  ;;  %p86_p8 = scmp.ne.s32.totalorder %s50_s1, %s85_s24  ;;  %p91_p10 = scmp.lt.s32.totalorder %s85_s24, %s85_s24 }
  0x18   :  { %v36_v7 = vsub.s32 %v33_v5, %v35_v6  ;;  %p92_p11 = por %p91_p10, %p90_p9 }
  0x1a   :  { %p93_p12 = pnand %p92_p11, %p86_p8 }
  0x93   :  { %v30_v8 = vpop.permute.xlu0 %29 }
  0x94   :  { %v37_v11 = vrot.slane %v30_v8, %v36_v7 }
  0x96   :  { %v39_v12 = vmul.f32 %v37_v11, %v24_v9  ;;  %v40_v13 = vmul.f32 %v37_v11, %v25_v10 }
  0x98   :  { %41 = vst [vmem:[#allocation5] sm:$0xff] %v39_v12  ;;  %42 = vst [vmem:[#allocation5 + $0x8] sm:$0xff] %v40_v13 }
  0x99   :  { %96 = shalt.err (!%p93_p12)
}
  0x9a   :  { %s97_s26 = scalar_lea.hbm %s159_s2, 256 }
  0x9b   :  { %p98_p13 = scmp.ne.s32.totalorder %s159_s2, %s97_s26  ;;  %p101_p0 = scmp.lt.u32.totalorder %s97_s26, %s159_s2 }
  0x9d   :  { %p103_p1 = pnand %p101_p0, %p98_p13 }
  0x9f   :  { %106 = shalt.err (!%p103_p1)
}
  0xa0   :  { %52 = dma.vmem_to_hbm [thread:$0]  %s50_s1, 256, %s159_s2, [#allocation4]  }
  0xa1   :  { %109 = dma.done.wait [#allocation4], 256  }
  0xa2   :  { %110 = vsyncadd [#allocation4], 4294967040 }
  0xa3   :  { %56 = vsyncpa [#allocation3], 1 }
  0xa4   :  { %57 = vsyncpa [#allocation4], 1 }

</bundles_post_ra>
